<compile_context>
chip_gen: v5e
topology: v5e:2x2
jax: 0.10.0
libtpu: 0.0.40
codegen_flags: <defaults>
</compile_context>

<pallas_src>
import jax
import jax.numpy as jnp
from jax.experimental import pallas as pl
from jax.experimental.pallas import tpu as pltpu

IN_FEATS = 7
OUT_FEATS = 256
HIDDEN = (32, 32, 96)
K = 2               # Laplacian polynomial order (k in the module)
P = 3               # number of capsules (p in the module)
EPS = 1e-5          # nn.LayerNorm default
LEAKY_SLOPE = 0.01  # nn.LeakyReLU default


def _layernorm(x, g, b):
    # One-pass stats: var = E[x^2] - mu^2 (one fewer full-width subtract and
    # half the cross-lane reductions vs. the two-pass form).
    mu = jnp.mean(x, axis=-1, keepdims=True)
    ms = jnp.mean(x * x, axis=-1, keepdims=True)
    var = ms - mu * mu
    return (x - mu) * jax.lax.rsqrt(var + EPS) * g + b


def _capsule(x, l_mat, w_packed):
    # TODO(synk): Primary_Capsule / Secondary_Capsule source was not provided;
    # implemented as a k-order Laplacian-polynomial GCN with p parallel capsule
    # heads concatenated along features (edge features unused).
    #
    # Fused formulation: build the K+1 Laplacian powers once, concatenate them
    # along the feature axis and hit the packed weight with a single MXU matmul
    # producing all P heads side by side.
    powers = [x]
    for _ in range(K):
        powers.append(
            jnp.dot(l_mat, powers[-1], preferred_element_type=jnp.float32))
    feat = jnp.concatenate(powers, axis=-1)                # [N, (K+1)*in_dim]
    caps = jnp.dot(feat, w_packed,
                   preferred_element_type=jnp.float32)     # [N, P*out_dim]
    return jnp.maximum(caps, 0.0)                          # ReLU activation


def encoder_kernel(x_ref, l_ref,
                   w1_ref, g1_ref, b1_ref,
                   c1w_ref, gc1_ref, bc1_ref,
                   c2w_ref, gc2_ref, bc2_ref,
                   w2_ref, w2f_ref, b2_ref,
                   o_ref):
    x = x_ref[...]
    l_mat = l_ref[...]

    # linear1 (bias=False) + LayerNorm(hidden_dims[0])
    h = jnp.dot(x, w1_ref[...], preferred_element_type=jnp.float32)
    h = _layernorm(h, g1_ref[...], b1_ref[...])

    # Primary_Capsule + LayerNorm(hidden_dims[1] * p)
    c1 = _capsule(h, l_mat, c1w_ref[...])                  # [N, 32*3]
    c1 = _layernorm(c1, gc1_ref[...], bc1_ref[...])

    # Secondary_Capsule + LayerNorm(hidden_dims[2] * p)
    c2 = _capsule(c1, l_mat, c2w_ref[...])                 # [N, 96*3]
    c2 = _layernorm(c2, gc2_ref[...], bc2_ref[...])

    # linear2(x_caps1.repeat(1, rep) + x_caps2) + LeakyReLU, with the repeat
    # folded into the weight:  (rep(c1) + c2) @ W2 == c2 @ W2 + c1 @ W2_fold
    out = (jnp.dot(c2, w2_ref[...], preferred_element_type=jnp.float32)
           + jnp.dot(c1, w2f_ref[...], preferred_element_type=jnp.float32)
           + b2_ref[...])
    o_ref[...] = jnp.where(out >= 0.0, out, LEAKY_SLOPE * out)


def _pack_capsule_weight(w, in_dim, out_dim):
    """[(K+1)*P*in_dim, out_dim] (row block = power i, head j) ->
       [(K+1)*in_dim, P*out_dim] (row block = power i, col block = head j)."""
    w4 = w.reshape(K + 1, P, in_dim, out_dim)
    w4 = jnp.transpose(w4, (0, 2, 1, 3))                   # [K+1, in, P, out]
    return w4.reshape((K + 1) * in_dim, P * out_dim)


def init_params(key):
    ks = jax.random.split(key, 4)
    d0, d1, d2 = HIDDEN
    params = {
        "w1": jax.random.normal(ks[0], (IN_FEATS, d0), jnp.float32) * 0.1,
        "g1": jnp.ones((1, d0), jnp.float32),
        "b1": jnp.zeros((1, d0), jnp.float32),
        # capsule weights stacked as [(k+1)*p*in_dim, out_dim]
        "c1w": jax.random.normal(ks[1], ((K + 1) * P * d0, d1),
                                 jnp.float32) * 0.1,
        "gc1": jnp.ones((1, d1 * P), jnp.float32),
        "bc1": jnp.zeros((1, d1 * P), jnp.float32),
        "c2w": jax.random.normal(ks[2], ((K + 1) * P * d1 * P, d2),
                                 jnp.float32) * 0.1,
        "gc2": jnp.ones((1, d2 * P), jnp.float32),
        "bc2": jnp.zeros((1, d2 * P), jnp.float32),
        "w2": jax.random.normal(ks[3], (d2 * P, OUT_FEATS), jnp.float32) * 0.05,
        "b2": jnp.zeros((1, OUT_FEATS), jnp.float32),
    }
    return params


def task_graph_encoder(X, L, params):
    N = X.shape[0]
    d0, d1, d2 = HIDDEN

    # Wrapper-side weight re-packing / folding (layout plumbing, not compute).
    c1w_packed = _pack_capsule_weight(params["c1w"], d0, d1)        # [96, 96]
    c2w_packed = _pack_capsule_weight(params["c2w"], d1 * P, d2)    # [288, 288]
    rep = (d2 * P) // (d1 * P)
    w2 = params["w2"]                                               # [288, 256]
    w2_fold = sum(w2[j * d1 * P:(j + 1) * d1 * P, :] for j in range(rep))

    args = (X, L,
            params["w1"], params["g1"], params["b1"],
            c1w_packed, params["gc1"], params["bc1"],
            c2w_packed, params["gc2"], params["bc2"],
            w2, w2_fold, params["b2"])
    in_specs = [pl.BlockSpec(memory_space=pltpu.MemorySpace.VMEM)
                for _ in args]

    # --- VMEM budget & cost estimate -----------------------------------------
    in_bytes = sum(int(a.size) * a.dtype.itemsize for a in args)
    out_bytes = N * OUT_FEATS * 4
    # intermediates: h, power-concat feats, c1, c2, pre-activation output
    act_bytes = N * 4 * ((K + 1) * max(d0, d1 * P) + d1 * P + d2 * P + OUT_FEATS)
    need = in_bytes + out_bytes + act_bytes
    vmem_limit = int(min(max(4 * need, 16 * 1024 * 1024), 64 * 1024 * 1024))

    flops = 2 * N * (
        IN_FEATS * d0                                   # linear1
        + K * N * d0                                    # L-power chain, caps1
        + (K + 1) * d0 * (d1 * P)                       # fused caps1 matmul
        + K * N * (d1 * P)                              # L-power chain, caps2
        + (K + 1) * (d1 * P) * (d2 * P)                 # fused caps2 matmul
        + (d2 * P) * OUT_FEATS + (d1 * P) * OUT_FEATS)  # linear2 (+ folded skip)
    cost = pl.CostEstimate(flops=flops,
                           transcendentals=3 * N,       # 3 LayerNorm rsqrts/row
                           bytes_accessed=in_bytes + out_bytes)

    return pl.pallas_call(
        encoder_kernel,
        out_shape=jax.ShapeDtypeStruct((N, OUT_FEATS), jnp.float32),
        in_specs=in_specs,
        out_specs=pl.BlockSpec(memory_space=pltpu.MemorySpace.VMEM),
        compiler_params=pltpu.CompilerParams(vmem_limit_bytes=vmem_limit),
        cost_estimate=cost,
    )(*args)


if __name__ == "__main__":
    key = jax.random.PRNGKey(0)
    k_x, k_a, k_p = jax.random.split(key, 3)

    N = 8  # number of graph nodes
    X = jax.random.normal(k_x, (N, IN_FEATS), jnp.float32)

    # deterministic graph Laplacian L = D - A from a random symmetric adjacency
    A = (jax.random.uniform(k_a, (N, N)) > 0.6).astype(jnp.float32)
    A = jnp.triu(A, 1)
    A = A + A.T
    L = jnp.diag(jnp.sum(A, axis=1)) - A

    params = init_params(k_p)

    out = task_graph_encoder(X, L, params)
    out = jax.block_until_ready(out)
    assert out.shape == (N, OUT_FEATS)
    assert bool(jnp.all(jnp.isfinite(out)))
    print("KERNEL_OK")
</pallas_src>

<mosaic_0001>
module attributes {stable_mosaic.version = 11 : i64} {
  func.func @encoder_kernel(%arg0: memref<8x7xf32, #tpu.memory_space<vmem>>, %arg1: memref<8x8xf32, #tpu.memory_space<vmem>>, %arg2: memref<7x32xf32, #tpu.memory_space<vmem>>, %arg3: memref<1x32xf32, #tpu.memory_space<vmem>>, %arg4: memref<1x32xf32, #tpu.memory_space<vmem>>, %arg5: memref<96x96xf32, #tpu.memory_space<vmem>>, %arg6: memref<1x96xf32, #tpu.memory_space<vmem>>, %arg7: memref<1x96xf32, #tpu.memory_space<vmem>>, %arg8: memref<288x288xf32, #tpu.memory_space<vmem>>, %arg9: memref<1x288xf32, #tpu.memory_space<vmem>>, %arg10: memref<1x288xf32, #tpu.memory_space<vmem>>, %arg11: memref<288x256xf32, #tpu.memory_space<vmem>>, %arg12: memref<96x256xf32, #tpu.memory_space<vmem>>, %arg13: memref<1x256xf32, #tpu.memory_space<vmem>>, %arg14: memref<8x256xf32, #tpu.memory_space<vmem>>) attributes {dimension_semantics = [], scalar_prefetch = 0 : i64, scratch_operands = 0 : i64, tpu.core_type = #tpu.core_type<tc>} {
    %c0 = arith.constant 0 : index
    %c0_0 = arith.constant 0 : index
    %0 = vector.load %arg0[%c0, %c0_0] : memref<8x7xf32, #tpu.memory_space<vmem>>, vector<8x7xf32>
    %c0_1 = arith.constant 0 : index
    %c0_2 = arith.constant 0 : index
    %1 = vector.load %arg1[%c0_1, %c0_2] : memref<8x8xf32, #tpu.memory_space<vmem>>, vector<8x8xf32>
    %c0_3 = arith.constant 0 : index
    %c0_4 = arith.constant 0 : index
    %2 = vector.load %arg2[%c0_3, %c0_4] : memref<7x32xf32, #tpu.memory_space<vmem>>, vector<7x32xf32>
    %cst = arith.constant dense<0.000000e+00> : vector<8x32xf32>
    %3 = tpu.matmul %0, %2, %cst {dimension_numbers = #tpu.dot_dimension_numbers<[1], [0], [0], [1], [0, 0, 1, 1], [], []>} : vector<8x7xf32>, vector<7x32xf32>, vector<8x32xf32> -> vector<8x32xf32>
    %c0_5 = arith.constant 0 : index
    %c0_6 = arith.constant 0 : index
    %4 = vector.load %arg3[%c0_5, %c0_6] : memref<1x32xf32, #tpu.memory_space<vmem>>, vector<1x32xf32>
    %c0_7 = arith.constant 0 : index
    %c0_8 = arith.constant 0 : index
    %5 = vector.load %arg4[%c0_7, %c0_8] : memref<1x32xf32, #tpu.memory_space<vmem>>, vector<1x32xf32>
    %cst_9 = arith.constant dense<0.000000e+00> : vector<8xf32>
    %6 = vector.multi_reduction <add>, %3, %cst_9 [1] : vector<8x32xf32> to vector<8xf32>
    %7 = vector.shape_cast %6 : vector<8xf32> to vector<8x1xf32>
    %cst_10 = arith.constant 3.200000e+01 : f32
    %8 = vector.broadcast %cst_10 : f32 to vector<8x1xf32>
    %9 = arith.divf %7, %8 : vector<8x1xf32>
    %10 = arith.mulf %3, %3 : vector<8x32xf32>
    %cst_11 = arith.constant dense<0.000000e+00> : vector<8xf32>
    %11 = vector.multi_reduction <add>, %10, %cst_11 [1] : vector<8x32xf32> to vector<8xf32>
    %12 = vector.shape_cast %11 : vector<8xf32> to vector<8x1xf32>
    %cst_12 = arith.constant 3.200000e+01 : f32
    %13 = vector.broadcast %cst_12 : f32 to vector<8x1xf32>
    %14 = arith.divf %12, %13 : vector<8x1xf32>
    %15 = arith.mulf %9, %9 : vector<8x1xf32>
    %16 = arith.subf %14, %15 : vector<8x1xf32>
    %17 = vector.broadcast %9 : vector<8x1xf32> to vector<8x32xf32>
    %18 = arith.subf %3, %17 : vector<8x32xf32>
    %cst_13 = arith.constant 9.99999974E-6 : f32
    %19 = vector.broadcast %cst_13 : f32 to vector<8x1xf32>
    %20 = arith.addf %16, %19 : vector<8x1xf32>
    %21 = math.rsqrt %20 : vector<8x1xf32>
    %22 = vector.broadcast %21 : vector<8x1xf32> to vector<8x32xf32>
    %23 = arith.mulf %18, %22 : vector<8x32xf32>
    %24 = vector.broadcast %4 : vector<1x32xf32> to vector<8x32xf32>
    %25 = arith.mulf %23, %24 : vector<8x32xf32>
    %26 = vector.broadcast %5 : vector<1x32xf32> to vector<8x32xf32>
    %27 = arith.addf %25, %26 : vector<8x32xf32>
    %c0_14 = arith.constant 0 : index
    %c0_15 = arith.constant 0 : index
    %28 = vector.load %arg5[%c0_14, %c0_15] : memref<96x96xf32, #tpu.memory_space<vmem>>, vector<96x96xf32>
    %cst_16 = arith.constant dense<0.000000e+00> : vector<8x32xf32>
    %29 = tpu.matmul %1, %27, %cst_16 {dimension_numbers = #tpu.dot_dimension_numbers<[1], [0], [0], [1], [0, 0, 1, 1], [], []>} : vector<8x8xf32>, vector<8x32xf32>, vector<8x32xf32> -> vector<8x32xf32>
    %cst_17 = arith.constant dense<0.000000e+00> : vector<8x32xf32>
    %30 = tpu.matmul %1, %29, %cst_17 {dimension_numbers = #tpu.dot_dimension_numbers<[1], [0], [0], [1], [0, 0, 1, 1], [], []>} : vector<8x8xf32>, vector<8x32xf32>, vector<8x32xf32> -> vector<8x32xf32>
    %31 = tpu.concatenate %27, %29, %30 in 1 : vector<8x32xf32>, vector<8x32xf32>, vector<8x32xf32> -> vector<8x96xf32>
    %cst_18 = arith.constant dense<0.000000e+00> : vector<8x96xf32>
    %32 = tpu.matmul %31, %28, %cst_18 {dimension_numbers = #tpu.dot_dimension_numbers<[1], [0], [0], [1], [0, 0, 1, 1], [], []>} : vector<8x96xf32>, vector<96x96xf32>, vector<8x96xf32> -> vector<8x96xf32>
    %cst_19 = arith.constant 0.000000e+00 : f32
    %33 = vector.broadcast %cst_19 : f32 to vector<8x96xf32>
    %34 = arith.maximumf %32, %33 : vector<8x96xf32>
    %c0_20 = arith.constant 0 : index
    %c0_21 = arith.constant 0 : index
    %35 = vector.load %arg6[%c0_20, %c0_21] : memref<1x96xf32, #tpu.memory_space<vmem>>, vector<1x96xf32>
    %c0_22 = arith.constant 0 : index
    %c0_23 = arith.constant 0 : index
    %36 = vector.load %arg7[%c0_22, %c0_23] : memref<1x96xf32, #tpu.memory_space<vmem>>, vector<1x96xf32>
    %cst_24 = arith.constant dense<0.000000e+00> : vector<8xf32>
    %37 = vector.multi_reduction <add>, %34, %cst_24 [1] : vector<8x96xf32> to vector<8xf32>
    %38 = vector.shape_cast %37 : vector<8xf32> to vector<8x1xf32>
    %cst_25 = arith.constant 9.600000e+01 : f32
    %39 = vector.broadcast %cst_25 : f32 to vector<8x1xf32>
    %40 = arith.divf %38, %39 : vector<8x1xf32>
    %41 = arith.mulf %34, %34 : vector<8x96xf32>
    %cst_26 = arith.constant dense<0.000000e+00> : vector<8xf32>
    %42 = vector.multi_reduction <add>, %41, %cst_26 [1] : vector<8x96xf32> to vector<8xf32>
    %43 = vector.shape_cast %42 : vector<8xf32> to vector<8x1xf32>
    %cst_27 = arith.constant 9.600000e+01 : f32
    %44 = vector.broadcast %cst_27 : f32 to vector<8x1xf32>
    %45 = arith.divf %43, %44 : vector<8x1xf32>
    %46 = arith.mulf %40, %40 : vector<8x1xf32>
    %47 = arith.subf %45, %46 : vector<8x1xf32>
    %48 = vector.broadcast %40 : vector<8x1xf32> to vector<8x96xf32>
    %49 = arith.subf %34, %48 : vector<8x96xf32>
    %cst_28 = arith.constant 9.99999974E-6 : f32
    %50 = vector.broadcast %cst_28 : f32 to vector<8x1xf32>
    %51 = arith.addf %47, %50 : vector<8x1xf32>
    %52 = math.rsqrt %51 : vector<8x1xf32>
    %53 = vector.broadcast %52 : vector<8x1xf32> to vector<8x96xf32>
    %54 = arith.mulf %49, %53 : vector<8x96xf32>
    %55 = vector.broadcast %35 : vector<1x96xf32> to vector<8x96xf32>
    %56 = arith.mulf %54, %55 : vector<8x96xf32>
    %57 = vector.broadcast %36 : vector<1x96xf32> to vector<8x96xf32>
    %58 = arith.addf %56, %57 : vector<8x96xf32>
    %c0_29 = arith.constant 0 : index
    %c0_30 = arith.constant 0 : index
    %59 = vector.load %arg8[%c0_29, %c0_30] : memref<288x288xf32, #tpu.memory_space<vmem>>, vector<288x288xf32>
    %cst_31 = arith.constant dense<0.000000e+00> : vector<8x96xf32>
    %60 = tpu.matmul %1, %58, %cst_31 {dimension_numbers = #tpu.dot_dimension_numbers<[1], [0], [0], [1], [0, 0, 1, 1], [], []>} : vector<8x8xf32>, vector<8x96xf32>, vector<8x96xf32> -> vector<8x96xf32>
    %cst_32 = arith.constant dense<0.000000e+00> : vector<8x96xf32>
    %61 = tpu.matmul %1, %60, %cst_32 {dimension_numbers = #tpu.dot_dimension_numbers<[1], [0], [0], [1], [0, 0, 1, 1], [], []>} : vector<8x8xf32>, vector<8x96xf32>, vector<8x96xf32> -> vector<8x96xf32>
    %62 = tpu.concatenate %58, %60, %61 in 1 : vector<8x96xf32>, vector<8x96xf32>, vector<8x96xf32> -> vector<8x288xf32>
    %cst_33 = arith.constant dense<0.000000e+00> : vector<8x288xf32>
    %63 = tpu.matmul %62, %59, %cst_33 {dimension_numbers = #tpu.dot_dimension_numbers<[1], [0], [0], [1], [0, 0, 1, 1], [], []>} : vector<8x288xf32>, vector<288x288xf32>, vector<8x288xf32> -> vector<8x288xf32>
    %cst_34 = arith.constant 0.000000e+00 : f32
    %64 = vector.broadcast %cst_34 : f32 to vector<8x288xf32>
    %65 = arith.maximumf %63, %64 : vector<8x288xf32>
    %c0_35 = arith.constant 0 : index
    %c0_36 = arith.constant 0 : index
    %66 = vector.load %arg9[%c0_35, %c0_36] : memref<1x288xf32, #tpu.memory_space<vmem>>, vector<1x288xf32>
    %c0_37 = arith.constant 0 : index
    %c0_38 = arith.constant 0 : index
    %67 = vector.load %arg10[%c0_37, %c0_38] : memref<1x288xf32, #tpu.memory_space<vmem>>, vector<1x288xf32>
    %cst_39 = arith.constant dense<0.000000e+00> : vector<8xf32>
    %68 = vector.multi_reduction <add>, %65, %cst_39 [1] : vector<8x288xf32> to vector<8xf32>
    %69 = vector.shape_cast %68 : vector<8xf32> to vector<8x1xf32>
    %cst_40 = arith.constant 2.880000e+02 : f32
    %70 = vector.broadcast %cst_40 : f32 to vector<8x1xf32>
    %71 = arith.divf %69, %70 : vector<8x1xf32>
    %72 = arith.mulf %65, %65 : vector<8x288xf32>
    %cst_41 = arith.constant dense<0.000000e+00> : vector<8xf32>
    %73 = vector.multi_reduction <add>, %72, %cst_41 [1] : vector<8x288xf32> to vector<8xf32>
    %74 = vector.shape_cast %73 : vector<8xf32> to vector<8x1xf32>
    %cst_42 = arith.constant 2.880000e+02 : f32
    %75 = vector.broadcast %cst_42 : f32 to vector<8x1xf32>
    %76 = arith.divf %74, %75 : vector<8x1xf32>
    %77 = arith.mulf %71, %71 : vector<8x1xf32>
    %78 = arith.subf %76, %77 : vector<8x1xf32>
    %79 = vector.broadcast %71 : vector<8x1xf32> to vector<8x288xf32>
    %80 = arith.subf %65, %79 : vector<8x288xf32>
    %cst_43 = arith.constant 9.99999974E-6 : f32
    %81 = vector.broadcast %cst_43 : f32 to vector<8x1xf32>
    %82 = arith.addf %78, %81 : vector<8x1xf32>
    %83 = math.rsqrt %82 : vector<8x1xf32>
    %84 = vector.broadcast %83 : vector<8x1xf32> to vector<8x288xf32>
    %85 = arith.mulf %80, %84 : vector<8x288xf32>
    %86 = vector.broadcast %66 : vector<1x288xf32> to vector<8x288xf32>
    %87 = arith.mulf %85, %86 : vector<8x288xf32>
    %88 = vector.broadcast %67 : vector<1x288xf32> to vector<8x288xf32>
    %89 = arith.addf %87, %88 : vector<8x288xf32>
    %c0_44 = arith.constant 0 : index
    %c0_45 = arith.constant 0 : index
    %90 = vector.load %arg11[%c0_44, %c0_45] : memref<288x256xf32, #tpu.memory_space<vmem>>, vector<288x256xf32>
    %cst_46 = arith.constant dense<0.000000e+00> : vector<8x256xf32>
    %91 = tpu.matmul %89, %90, %cst_46 {dimension_numbers = #tpu.dot_dimension_numbers<[1], [0], [0], [1], [0, 0, 1, 1], [], []>} : vector<8x288xf32>, vector<288x256xf32>, vector<8x256xf32> -> vector<8x256xf32>
    %c0_47 = arith.constant 0 : index
    %c0_48 = arith.constant 0 : index
    %92 = vector.load %arg12[%c0_47, %c0_48] : memref<96x256xf32, #tpu.memory_space<vmem>>, vector<96x256xf32>
    %cst_49 = arith.constant dense<0.000000e+00> : vector<8x256xf32>
    %93 = tpu.matmul %58, %92, %cst_49 {dimension_numbers = #tpu.dot_dimension_numbers<[1], [0], [0], [1], [0, 0, 1, 1], [], []>} : vector<8x96xf32>, vector<96x256xf32>, vector<8x256xf32> -> vector<8x256xf32>
    %94 = arith.addf %91, %93 : vector<8x256xf32>
    %c0_50 = arith.constant 0 : index
    %c0_51 = arith.constant 0 : index
    %95 = vector.load %arg13[%c0_50, %c0_51] : memref<1x256xf32, #tpu.memory_space<vmem>>, vector<1x256xf32>
    %96 = vector.broadcast %95 : vector<1x256xf32> to vector<8x256xf32>
    %97 = arith.addf %94, %96 : vector<8x256xf32>
    %cst_52 = arith.constant 0.000000e+00 : f32
    %98 = vector.broadcast %cst_52 : f32 to vector<8x256xf32>
    %99 = arith.cmpf oge, %97, %98 : vector<8x256xf32>
    %cst_53 = arith.constant 0.00999999977 : f32
    %100 = vector.broadcast %cst_53 : f32 to vector<8x256xf32>
    %101 = arith.mulf %100, %97 : vector<8x256xf32>
    %102 = arith.select %99, %97, %101 : vector<8x256xi1>, vector<8x256xf32>
    %c0_54 = arith.constant 0 : index
    %c0_55 = arith.constant 0 : index
    %103 = vector.load %arg14[%c0_54, %c0_55] : memref<8x256xf32, #tpu.memory_space<vmem>>, vector<8x256xf32>
    tpu.vector_store %arg14[%c0_54, %c0_55], %102 {strides = array<i32>} : memref<8x256xf32, #tpu.memory_space<vmem>>, vector<8x256xf32>,
    return
  }
}

</mosaic_0001>

<bundles_post_ra>
// kernel: tpu_custom_call.1
= control target key start
LH: loop header
LB: loop body
LE: loop exit
PB: predicated region body
PF: predicated region fallthrough
CT: control target
= control target key end

     0   :  { %19 = vsyncpa [#allocation3], 0  ;;  %s1693_s0 = inlined_call_operand.hbm [shape: f32[8,7], index: 0, kind: input, shape index: {}]   ;;  %s1694_s1 = inlined_call_operand.hbm [shape: f32[8,8], index: 1, kind: input, shape index: {}]   ;;  %s1695_s2 = inlined_call_operand.hbm [shape: f32[7,32], index: 2, kind: input, shape index: {}]   ;;  %s1696_s3 = inlined_call_operand.hbm [shape: f32[1,32], index: 3, kind: input, shape index: {}]   ;;  %s1697_s4 = inlined_call_operand.hbm [shape: f32[1,32], index: 4, kind: input, shape index: {}]   ;;  %s1698_s5 = inlined_call_operand.hbm [shape: f32[96,96], index: 5, kind: input, shape index: {}]   ;;  %s1699_s6 = inlined_call_operand.hbm [shape: f32[1,96], index: 6, kind: input, shape index: {}]   ;;  %s1700_s7 = inlined_call_operand.hbm [shape: f32[1,96], index: 7, kind: input, shape index: {}]   ;;  %s1701_s8 = inlined_call_operand.hbm [shape: f32[288,288], index: 8, kind: input, shape index: {}]   ;;  %s1702_s9 = inlined_call_operand.vmem [shape: f32[1,288], index: 9, kind: input, shape index: {}]   ;;  %s1703_s10 = inlined_call_operand.vmem [shape: f32[1,288], index: 10, kind: input, shape index: {}]   ;;  %s1704_s11 = inlined_call_operand.hbm [shape: f32[288,256], index: 11, kind: input, shape index: {}]   ;;  %s1705_s12 = inlined_call_operand.hbm [shape: f32[96,256], index: 12, kind: input, shape index: {}]   ;;  %s1706_s13 = inlined_call_operand.vmem [shape: f32[1,256], index: 13, kind: input, shape index: {}]   ;;  %s1707_s14 = inlined_call_operand.hbm [shape: f32[8,256], index: 14, kind: output, shape index: {}]  }
   0x1   :  { %20 = vsyncpa [#allocation6], 0 }
   0x2   :  { %21 = vsyncpa [#allocation9], 0 }
   0x3   :  { %22 = vsyncpa [#allocation12], 0 }
   0x4   :  { %23 = vsyncpa [#allocation15], 0 }
   0x5   :  { %24 = vsyncpa [#allocation18], 0  ;;  %s42_s15 = sshll.u32 %s1694_s1, 4  ;;  %s43_s15 = int_to_ptr.hbm [resolvable:$true] %s42_s15 }
   0x6   :  { %25 = vsyncpa [#allocation4], 0  ;;  %s1473_s16 = smov [#allocation5]   ;;  %s64_s20 = sshll.u32 %s1696_s3, 4  ;;  %s65_s20 = int_to_ptr.hbm [resolvable:$true] %s64_s20 }
   0x7   :  { %s44_s17 = sshll.u32 %s1473_s16, 4  ;;  %s1474_s21 = smov [#allocation8]   ;;  %s45_s17 = int_to_ptr.vmem [resolvable:$true] %s44_s17 }
   0x8   :  { %47 = dma.hbm_to_vmem [thread:$0]  %s43_s15, 128, %s45_s17, [#allocation6]  }
   0x9   :  { %s66_s22 = sshll.u32 %s1474_s21, 4  ;;  %s85_s25 = sshll.u32 %s1698_s5, 4  ;;  %s67_s22 = int_to_ptr.vmem [resolvable:$true] %s66_s22  ;;  %s86_s25 = int_to_ptr.hbm [resolvable:$true] %s85_s25 }
   0xa   :  { %69 = dma.hbm_to_vmem [thread:$0]  %s65_s20, 16, %s67_s22, [#allocation9]  }
   0xb   :  { %s1475_s1 = smov [#allocation11]   ;;  %s110_s29 = sshll.u32 %s1700_s7, 4  ;;  %s111_s29 = int_to_ptr.hbm [resolvable:$true] %s110_s29 }
   0xc   :  { %s87_s26 = sshll.u32 %s1475_s1, 4  ;;  %s1476_s30 = smov 128   ;;  %s88_s26 = int_to_ptr.vmem [resolvable:$true] %s87_s26 }
   0xd   :  { %s1477_s3 = smov 8   ;;  %s1478_s15 = smov [#allocation14]  }
   0xe   :  { %93 = dma.hbm_to_vmem [thread:$0]  %s86_s25, 1536, %s88_s26, [#allocation12], %s1476_s30, %s1476_s30, %s1477_s3  }
   0xf   :  { %s112_s16 = sshll.u32 %s1478_s15, 4  ;;  %s137_s5 = sshll.u32 %s1704_s11, 4  ;;  %s113_s16 = int_to_ptr.vmem [resolvable:$true] %s112_s16  ;;  %s138_s5 = int_to_ptr.hbm [resolvable:$true] %s137_s5 }
  0x10   :  { %115 = dma.hbm_to_vmem [thread:$0]  %s111_s29, 16, %s113_s16, [#allocation15]  }
  0x11   :  { %s1479_s19 = smov [#allocation17]   ;;  %s31_s7 = sshll.u32 %s1693_s0, 4  ;;  %s32_s7 = int_to_ptr.hbm [resolvable:$true] %s31_s7 }
  0x12   :  { %s139_s20 = sshll.u32 %s1479_s19, 4  ;;  %s1480_s23 = smov 256   ;;  %s140_s20 = int_to_ptr.vmem [resolvable:$true] %s139_s20 }
  0x13   :  { %s1481_s24 = smov 16   ;;  %s1482_s25 = smov [#allocation2]  }
  0x14   :  { %145 = dma.hbm_to_vmem [thread:$0]  %s138_s5, 9216, %s140_s20, [#allocation18], %s1480_s23, %s1480_s23, %s1481_s24  }
  0x15   :  { %s33_s1 = sshll.u32 %s1482_s25, 4  ;;  %s53_s27 = sshll.u32 %s1695_s2, 4  ;;  %s34_s1 = int_to_ptr.vmem [resolvable:$true] %s33_s1  ;;  %s54_s27 = int_to_ptr.hbm [resolvable:$true] %s53_s27 }
  0x16   :  { %36 = dma.hbm_to_vmem [thread:$0]  %s32_s7, 128, %s34_s1, [#allocation3]  }
  0x17   :  { %s75_s0 = sshll.u32 %s1697_s4, 4  ;;  %s1483_s30 = smov [#allocation7]   ;;  %s76_s0 = int_to_ptr.hbm [resolvable:$true] %s75_s0 }
  0x18   :  { %s55_s3 = sshll.u32 %s1483_s30, 4  ;;  %s1484_s15 = smov [#allocation10]   ;;  %s56_s3 = int_to_ptr.vmem [resolvable:$true] %s55_s3 }
  0x19   :  { %58 = dma.hbm_to_vmem [thread:$0]  %s54_s27, 128, %s56_s3, [#allocation6]  }
  0x1a   :  { %s77_s16 = sshll.u32 %s1484_s15, 4  ;;  %s99_s5 = sshll.u32 %s1699_s6, 4  ;;  %s78_s16 = int_to_ptr.vmem [resolvable:$true] %s77_s16  ;;  %s100_s5 = int_to_ptr.hbm [resolvable:$true] %s99_s5 }
  0x1b   :  { %80 = dma.hbm_to_vmem [thread:$0]  %s76_s0, 16, %s78_s16, [#allocation9]  }
  0x1c   :  { %s120_s20 = sshll.u32 %s1701_s8, 4  ;;  %s1485_s21 = smov [#allocation13]   ;;  %s121_s20 = int_to_ptr.hbm [resolvable:$true] %s120_s20 }
  0x1d   :  { %s101_s4 = sshll.u32 %s1485_s21, 4  ;;  %s1486_s22 = smov [#allocation16]   ;;  %s102_s4 = int_to_ptr.vmem [resolvable:$true] %s101_s4 }
  0x1e   :  { %104 = dma.hbm_to_vmem [thread:$0]  %s100_s5, 16, %s102_s4, [#allocation12]  }
  0x1f   :  { %s122_s7 = sshll.u32 %s1486_s22, 4  ;;  %s1487_s25 = smov 384   ;;  %s123_s7 = int_to_ptr.vmem [resolvable:$true] %s122_s7 }
  0x20   :  { %s1488_s1 = smov 24   ;;  %s150_s26 = sshll.u32 %s1705_s12, 4  ;;  %s151_s26 = int_to_ptr.hbm [resolvable:$true] %s150_s26 }
  0x21   :  { %128 = dma.hbm_to_vmem [thread:$0]  %s121_s20, 13824, %s123_s7, [#allocation15], %s1487_s25, %s1487_s25, %s1488_s1  }
  0x22   :  { %s1489_s27 = smov [#allocation19]  }
  0x23   :  { %s152_s28 = sshll.u32 %s1489_s27, 4  ;;  %s153_s28 = int_to_ptr.vmem [resolvable:$true] %s152_s28 }
  0x24   :  { %158 = dma.hbm_to_vmem [thread:$0]  %s151_s26, 3072, %s153_s28, [#allocation18], %s1480_s23, %s1480_s23, %s1481_s24  }
  0x25   :  { %1459 = dma.done.wait [#allocation3], 128  }
  0x26   :  { %1460 = vsyncadd [#allocation3], 4294967168 }
  0x27   :  { %1461 = dma.done.wait [#allocation6], 256  }
  0x28   :  { %1462 = vsyncadd [#allocation6], 4294967040 }
  0x29   :  { %1463 = dma.done.wait [#allocation9], 32  }
  0x2a   :  { %1464 = vsyncadd [#allocation9], 4294967264 }
  0x2b   :  { %1465 = dma.done.wait [#allocation12], 1552  }
  0x2c   :  { %1466 = vsyncadd [#allocation12], 4294965744 }
  0x2d   :  { %1467 = dma.done.wait [#allocation15], 13840  }
  0x2e   :  { %1468 = vsyncadd [#allocation15], 4294953456 }
  0x2f   :  { %1469 = dma.done.wait [#allocation18], 12288  }
  0x30   :  { %1470 = vsyncadd [#allocation18], 4294955008  ;;  %vm212_vm0 = vcmask 1046528   ;;  %vm208_vm1 = vcmask 56320   ;;  %v207_v0 = vld [vmem:[#allocation7] sm:$0x7f] }
  0x31   :  { %v205_v1 = vld [vmem:[#allocation2] sm:$0xff]  ;;  %1117 = vmatpush.msk.msra.mxu0 %vm212_vm0, %v207_v0  ;;  %vm238_vm2 = vcmask 261120   ;;  %v1490_v6 = vmov 32.0   ;;  %v1155_v27 = vld [vmem:[#allocation8] ss:$0 sm:$0xff]  ;;  %v1613_v33 = vld [vmem:[#allocation5] sm:$0xff] }
  0x32   :  { %1118 = vmatmul.msk.f32.vlgmr.msra.gmra.mxu0 %vm208_vm1, %v205_v1  ;;  %1159 = vrcp.f32 %v1490_v6  ;;  %v1156_v30 = vld [vmem:[#allocation10] ss:$0 sm:$0xff]  ;;  %vm290_vm7 = vcmask 64512   ;;  %s1491_s8 = smov 32   ;;  %v288_v36 = vld [vmem:[#allocation11 + $0x50] sm:$0xff]  ;;  %v287_v37 = vld [vmem:[#allocation11 + $0x48] sm:$0xff] }
  0x33   :  { %v289_v35 = vld [vmem:[#allocation11 + $0x58] sm:$0xff]  ;;  %v286_v38 = vld [vmem:[#allocation11 + $0x40] sm:$0xff]  ;;  %v284_v40 = vld [vmem:[#allocation11 + $0x30] sm:$0xff]  ;;  %s1492_s12 = smov 64   ;;  %vm343_vm8 = vcmask 523264   ;;  %vm345_vm9 = vcmask 785408  }
  0x34   :  { %353 = vmatpush.msra.mxu3 %v289_v35  ;;  %v285_v39 = vld [vmem:[#allocation11 + $0x38] sm:$0xff]  ;;  %v283_v41 = vld [vmem:[#allocation11 + $0x28] sm:$0xff]  ;;  %v282_v42 = vld [vmem:[#allocation11 + $0x20] sm:$0xff]  ;;  %v1493_v57 = vmov 96.0   ;;  %s1494_s23 = smov 96   ;;  %s1496_s3 = smov [#allocation20]  }
  0x35   :  { %v281_v43 = vld [vmem:[#allocation11 + $0x18] sm:$0xff]  ;;  %v280_v44 = vld [vmem:[#allocation11 + $0x10] sm:$0xff]  ;;  %v279_v45 = vld [vmem:[#allocation11 + $0x8] sm:$0xff]  ;;  %s1102_s17 = sshll.u32 %s1707_s14, 4  ;;  %s1103_s17 = int_to_ptr.hbm [resolvable:$true] %s1102_s17 }
  0x36   :  { %354 = vmatpush.msra.mxu3 %v288_v36  ;;  %v278_v47 = vld [vmem:[#allocation11] sm:$0xff] }
  0x37   :  { %v414_v35 = vld [vmem:[#allocation16 + $0x18] sm:$0xff] }
  0x38   :  { %v1160_v7 = vpop.eup %1159  ;;  %355 = vmatpush.msra.mxu3 %v287_v37  ;;  %v411_v37 = vld [vmem:[#allocation16] sm:$0xff] }
  0x39   :  { %v243_v8 = vmul.f32 32.0, %v1160_v7  ;;  %vm247_vm3 = vweird.f32 %v1160_v7 }
  0x3a   :  { %356 = vmatpush.msra.mxu3 %v286_v38  ;;  %v504_v38 = vld [vmem:[#allocation16 + $0x2e8] sm:$0xff] }
  0x3b   :  { %v244_v9 = vsub.f32 1.0, %v243_v8 }
  0x3c   :  { %357 = vmatpush.msra.mxu3 %v285_v39  ;;  %v501_v39 = vld [vmem:[#allocation16 + $0x2d0] sm:$0xff] }
  0x3d   :  { %v245_v10 = vmul.f32 %v1160_v7, %v244_v9 }
  0x3e   :  { %358 = vmatpush.msra.mxu3 %v284_v40  ;;  %v505_v40 = vld [vmem:[#allocation16 + $0x2f0] sm:$0xff] }
  0x3f   :  { %v246_v11 = vadd.f32 %v1160_v7, %v245_v10 }
  0x40   :  { %359 = vmatpush.msra.mxu3 %v283_v41  ;;  %v498_v41 = vld [vmem:[#allocation16 + $0x2b8] sm:$0xff] }
  0x41   :  { %v248_v13 = vsel %vm247_vm3, %v1160_v7, %v246_v11 }
  0x42   :  { %360 = vmatpush.msra.mxu3 %v282_v42  ;;  %v502_v42 = vld [vmem:[#allocation16 + $0x2d8] sm:$0xff] }
  0x44   :  { %361 = vmatpush.msra.mxu3 %v281_v43  ;;  %v499_v43 = vld [vmem:[#allocation16 + $0x2c0] sm:$0xff] }
  0x46   :  { %362 = vmatpush.msra.mxu3 %v280_v44  ;;  %v495_v44 = vld [vmem:[#allocation16 + $0x2a0] sm:$0xff] }
  0x48   :  { %363 = vmatpush.msra.mxu3 %v279_v45  ;;  %v516_v45 = vld [vmem:[#allocation16 + $0x348] sm:$0xff] }
  0x4a   :  { %364 = vmatpush.msra.mxu3 %v278_v47  ;;  %v513_v47 = vld [vmem:[#allocation16 + $0x330] sm:$0xff] }
  0x4c   :  { %651 = vmatpush.msrb.mxu3 %v505_v40  ;;  %v909_v40 = vld [vmem:[#allocation19 + $0xa0] sm:$0xff] }
  0x4e   :  { %652 = vmatpush.msrb.mxu3 %v502_v42  ;;  %v424_v42 = vld [vmem:[#allocation16 + $0x68] sm:$0xff] }
  0x50   :  { %653 = vmatpush.msrb.mxu3 %v499_v43  ;;  %v449_v43 = vld [vmem:[#allocation16 + $0x130] sm:$0xff] }
  0xaf   :  { %v233_v2 = vpop.f32.mrf.mxu0 }
  0xb0   :  { %v239_v3 = vsel %vm238_vm2, %v233_v2, 0.0  ;;  %v250_v4 = vmul.f32 %v233_v2, %v233_v2 }
  0xb1   :  { %240 = vadd.xlane.f32.xlu0 %v239_v3 }
  0xb2   :  { %v251_v5 = vsel %vm238_vm2, %v250_v4, 0.0 }
  0xb9   :  { %252 = vadd.xlane.f32.xlu0 %v251_v5 }
 0x124   :  { %v241_v12 = vpop.xlane.xlu0 %240 }
 0x125   :  { %v249_v14 = vmul.f32 %v248_v13, %v241_v12 }
 0x127   :  { %v255_v16 = vmul.f32 %v249_v14, %v249_v14  ;;  %v257_v26 = vsub.f32 %v233_v2, %v249_v14  ;;  %v1157_v14 = vld [vmem:[#allocation13] ss:$0 sm:$0xff] }
 0x12c   :  { %v253_v15 = vpop.xlane.xlu0 %252 }
 0x12d   :  { %v254_v17 = vmul.f32 %v253_v15, %v248_v13 }
 0x12f   :  { %v256_v18 = vsub.f32 %v254_v17, %v255_v16  ;;  %v1158_v17 = vld [vmem:[#allocation14] ss:$0 sm:$0xff] }
 0x131   :  { %v258_v19 = vadd.f32 1e-05, %v256_v18 }
 0x133   :  { %1161 = vrsqrt.f32 %v258_v19  ;;  %vm265_vm5 = vweird.f32 %v258_v19 }
 0x134   :  { %1163 = vrcp.f32 %v1493_v57  ;;  %v487_v57 = vld [vmem:[#allocation16 + $0x260] sm:$0xff] }
 0x139   :  { %v1162_v20 = vpop.eup %1161 }
 0x13a   :  { %v260_v21 = vmul.f32 %v1162_v20, %v258_v19  ;;  %vm266_vm4 = vweird.f32 %v1162_v20  ;;  %v1164_v58 = vpop.eup %1163 }
 0x13b   :  { %vm267_vm6 = vmor %vm265_vm5, %vm266_vm4  ;;  %v376_v59 = vmul.f32 96.0, %v1164_v58  ;;  %vm380_vm10 = vweird.f32 %v1164_v58 }
 0x13c   :  { %v261_v22 = vmul.f32 %v1162_v20, %v260_v21  ;;  %v453_v21 = vld [vmem:[#allocation16 + $0x150] sm:$0xff] }
 0x13d   :  { %v377_v60 = vsub.f32 1.0, %v376_v59  ;;  %v483_v59 = vld [vmem:[#allocation16 + $0x240] sm:$0xff] }
 0x13e   :  { %v262_v23 = vmul.f32 0.5, %v261_v22  ;;  %v450_v22 = vld [vmem:[#allocation16 + $0x138] sm:$0xff] }
 0x13f   :  { %v378_v61 = vmul.f32 %v1164_v58, %v377_v60  ;;  %v511_v60 = vld [vmem:[#allocation16 + $0x320] sm:$0xff] }
 0x140   :  { %v263_v24 = vsub.f32 1.5, %v262_v23  ;;  %v447_v23 = vld [vmem:[#allocation16 + $0x120] sm:$0xff] }
 0x141   :  { %v379_v62 = vadd.f32 %v1164_v58, %v378_v61  ;;  %v484_v61 = vld [vmem:[#allocation16 + $0x248] sm:$0xff] }
 0x142   :  { %v264_v25 = vmul.f32 %v1162_v20, %v263_v24  ;;  %v444_v24 = vld [vmem:[#allocation16 + $0x108] sm:$0xff] }
 0x143   :  { %v381_v0 = vsel %vm380_vm10, %v1164_v58, %v379_v62  ;;  %v454_v58 = vld [vmem:[#allocation16 + $0x158] sm:$0xff]  ;;  %v451_v62 = vld [vmem:[#allocation16 + $0x140] sm:$0xff] }
 0x144   :  { %v268_v28 = vsel %vm267_vm6, %v1162_v20, %v264_v25  ;;  %v456_v20 = vld [vmem:[#allocation16 + $0x168] sm:$0xff]  ;;  %v441_v25 = vld [vmem:[#allocation16 + $0xf0] sm:$0xff] }
 0x145   :  { %v269_v29 = vmul.f32 %v268_v28, %v257_v26  ;;  %v438_v26 = vld [vmem:[#allocation16 + $0xd8] sm:$0xff]  ;;  %v432_v28 = vld [vmem:[#allocation16 + $0xa8] sm:$0xff] }
 0x147   :  { %v273_v31 = vmul.f32 %v1155_v27, %v269_v29  ;;  %v435_v27 = vld [vmem:[#allocation16 + $0xc0] sm:$0xff]  ;;  %v429_v29 = vld [vmem:[#allocation16 + $0x90] sm:$0xff] }
 0x149   :  { %v277_v32 = vadd.f32 %v1156_v30, %v273_v31  ;;  %v426_v30 = vld [vmem:[#allocation16 + $0x78] sm:$0xff]  ;;  %v423_v31 = vld [vmem:[#allocation16 + $0x60] sm:$0xff] }
 0x14b   :  { %309 = vmatpush.msra.mxu1 %v277_v32 }
 0x14c   :  { %1119 = vmatmul.msk.f32.vlgmr.msra.gmra.mxu1 %vm290_vm7, %v1613_v33 }
 0x1c9   :  { %v311_v34 = vpop.f32.mrf.mxu1 }
 0x1ca   :  { %335 = vrot.lane.b32.xlu1 %v311_v34, %s1491_s8  ;;  %329 = vmatpush.msra.mxu2 %v311_v34  ;;  %v417_v34 = vld [vmem:[#allocation16 + $0x30] sm:$0xff] }
 0x1cb   :  { %1120 = vmatmul.msk.f32.vlgmr.msra.gmra.mxu2 %vm290_vm7, %v1613_v33 }
 0x1cc   :  { %571 = vmatpush.msrb.mxu2 %v456_v20  ;;  %v465_v20 = vld [vmem:[#allocation16 + $0x1b0] sm:$0xff] }
 0x1ce   :  { %572 = vmatpush.msrb.mxu2 %v453_v21  ;;  %v436_v21 = vld [vmem:[#allocation16 + $0xc8] sm:$0xff] }
 0x1d0   :  { %573 = vmatpush.msrb.mxu2 %v450_v22  ;;  %v466_v22 = vld [vmem:[#allocation16 + $0x1b8] sm:$0xff] }
 0x1d2   :  { %574 = vmatpush.msrb.mxu2 %v447_v23  ;;  %v497_v23 = vld [vmem:[#allocation16 + $0x2b0] sm:$0xff] }
 0x1d4   :  { %575 = vmatpush.msrb.mxu2 %v444_v24  ;;  %v462_v24 = vld [vmem:[#allocation16 + $0x198] sm:$0xff] }
 0x1d6   :  { %576 = vmatpush.msrb.mxu2 %v441_v25  ;;  %v433_v25 = vld [vmem:[#allocation16 + $0xb0] sm:$0xff] }
 0x1d8   :  { %577 = vmatpush.msrb.mxu2 %v438_v26  ;;  %v463_v26 = vld [vmem:[#allocation16 + $0x1a0] sm:$0xff] }
 0x1da   :  { %578 = vmatpush.msrb.mxu2 %v435_v27  ;;  %v494_v27 = vld [vmem:[#allocation16 + $0x298] sm:$0xff] }
 0x1dc   :  { %579 = vmatpush.msrb.mxu2 %v432_v28  ;;  %v459_v28 = vld [vmem:[#allocation16 + $0x180] sm:$0xff] }
 0x1de   :  { %580 = vmatpush.msrb.mxu2 %v429_v29  ;;  %v430_v29 = vld [vmem:[#allocation16 + $0x98] sm:$0xff] }
 0x1e0   :  { %581 = vmatpush.msrb.mxu2 %v426_v30  ;;  %v458_v30 = vld [vmem:[#allocation16 + $0x178] sm:$0xff] }
 0x1e2   :  { %582 = vmatpush.msrb.mxu2 %v423_v31  ;;  %v460_v31 = vld [vmem:[#allocation16 + $0x188] sm:$0xff] }
 0x23c   :  { %v336_v48 = vpop.permute.xlu1 %335 }
 0x23d   :  { %v342_v49 = vsel %vm238_vm2, %v277_v32, %v336_v48  ;;  %v420_v32 = vld [vmem:[#allocation16 + $0x48] sm:$0xff] }
 0x23e   :  { %583 = vmatpush.msrb.mxu2 %v420_v32  ;;  %v492_v48 = vld [vmem:[#allocation16 + $0x288] sm:$0xff]  ;;  %v491_v32 = vld [vmem:[#allocation16 + $0x280] sm:$0xff] }
 0x240   :  { %584 = vmatpush.msrb.mxu2 %v417_v34 }
 0x242   :  { %585 = vmatpush.msrb.mxu2 %v414_v35  ;;  %v455_v35 = vld [vmem:[#allocation16 + $0x160] sm:$0xff] }
 0x244   :  { %586 = vmatpush.msrb.mxu2 %v411_v37  ;;  %v488_v37 = vld [vmem:[#allocation16 + $0x268] sm:$0xff] }
 0x24e   :  { %v331_v46 = vpop.f32.mrf.mxu2 }
 0x24f   :  { %339 = vrot.lane.b32.xlu1 %v331_v46, %s1492_s12  ;;  %v496_v46 = vld [vmem:[#allocation16 + $0x2a8] sm:$0xff] }
 0x250   :  { %654 = vmatpush.msrb.mxu3 %v496_v46  ;;  %v421_v46 = vld [vmem:[#allocation16 + $0x50] sm:$0xff] }
 0x2c1   :  { %v340_v50 = vpop.permute.xlu1 %339 }
 0x2c2   :  { %v344_v51 = vsel %vm343_vm8, %v342_v49, %v340_v50  ;;  %v493_v49 = vld [vmem:[#allocation16 + $0x290] sm:$0xff] }
 0x2c3   :  { %1121 = vmatmul.msk.f32.vlgmr.msra.gmra.mxu3 %vm345_vm9, %v344_v51  ;;  %v489_v50 = vld [vmem:[#allocation16 + $0x270] sm:$0xff]  ;;  %v507_v51 = vld [vmem:[#allocation16 + $0x300] sm:$0xff] }
 0x2c4   :  { %655 = vmatpush.msrb.mxu3 %v493_v49  ;;  %v418_v49 = vld [vmem:[#allocation16 + $0x38] sm:$0xff] }
 0x346   :  { %v366_v52 = vpop.f32.mrf.mxu3 }
 0x347   :  { %v369_v53 = vmax.f32 %v366_v52, 0.0  ;;  %v517_v52 = vld [vmem:[#allocation16 + $0x350] sm:$0xff] }
 0x348   :  { %683 = vmatpush.msra.mxu2 %v517_v52  ;;  %v476_v52 = vld [vmem:[#allocation16 + $0x208] sm:$0xff] }
 0x349   :  { %v372_v54 = vsel %vm345_vm9, %v369_v53, 0.0  ;;  %v383_v55 = vmul.f32 %v369_v53, %v369_v53 }
 0x34a   :  { %373 = vadd.xlane.f32.xlu2 %v372_v54  ;;  %v457_v54 = vld [vmem:[#allocation16 + $0x170] sm:$0xff] }
 0x34b   :  { %v384_v56 = vsel %vm345_vm9, %v383_v55, 0.0  ;;  %v486_v55 = vld [vmem:[#allocation16 + $0x258] sm:$0xff] }
 0x352   :  { %385 = vadd.xlane.f32.xlu2 %v384_v56  ;;  %v514_v56 = vld [vmem:[#allocation16 + $0x338] sm:$0xff] }
 0x353   :  { %684 = vmatpush.msra.mxu2 %v514_v56  ;;  %v473_v56 = vld [vmem:[#allocation16 + $0x1f0] sm:$0xff] }
 0x355   :  { %685 = vmatpush.msra.mxu2 %v511_v60  ;;  %v431_v60 = vld [vmem:[#allocation16 + $0xa0] sm:$0xff] }
 0x3bd   :  { %v374_v63 = vpop.xlane.xlu2 %373 }
 0x3be   :  { %v382_v1 = vmul.f32 %v381_v0, %v374_v63  ;;  %v480_v63 = vld [vmem:[#allocation16 + $0x228] sm:$0xff] }
 0x3c0   :  { %v388_v3 = vmul.f32 %v382_v1, %v382_v1  ;;  %v390_v13 = vsub.f32 %v369_v53, %v382_v1  ;;  %v490_v53 = vld [vmem:[#allocation16 + $0x278] sm:$0xff]  ;;  %v481_v1 = vld [vmem:[#allocation16 + $0x230] sm:$0xff] }
 0x3c1   :  { %656 = vmatpush.msrb.mxu3 %v490_v53  ;;  %v415_v53 = vld [vmem:[#allocation16 + $0x20] sm:$0xff] }
 0x3c3   :  { %657 = vmatpush.msrb.mxu3 %v487_v57  ;;  %v437_v57 = vld [vmem:[#allocation16 + $0xd0] sm:$0xff] }
 0x3c5   :  { %v386_v2 = vpop.xlane.xlu2 %385  ;;  %658 = vmatpush.msrb.mxu3 %v484_v61  ;;  %v428_v61 = vld [vmem:[#allocation16 + $0x88] sm:$0xff] }
 0x3c6   :  { %v387_v4 = vmul.f32 %v386_v2, %v381_v0  ;;  %v508_v0 = vld [vmem:[#allocation16 + $0x308] sm:$0xff] }
 0x3c7   :  { %v448_v2 = vld [vmem:[#allocation16 + $0x128] sm:$0xff]  ;;  %686 = vmatpush.msra.mxu2 %v508_v0  ;;  %659 = vmatpush.msrb.mxu3 %v481_v1  ;;  %v897_v0 = vld [vmem:[#allocation19 + $0x40] sm:$0xff]  ;;  %v470_v1 = vld [vmem:[#allocation16 + $0x1d8] sm:$0xff] }
 0x3c8   :  { %v389_v5 = vsub.f32 %v387_v4, %v388_v3  ;;  %v477_v3 = vld [vmem:[#allocation16 + $0x210] sm:$0xff]  ;;  %v478_v4 = vld [vmem:[#allocation16 + $0x218] sm:$0xff] }
 0x3c9   :  { %660 = vmatpush.msrb.mxu3 %v478_v4  ;;  %v467_v4 = vld [vmem:[#allocation16 + $0x1c0] sm:$0xff] }
 0x3ca   :  { %v391_v6 = vadd.f32 1e-05, %v389_v5  ;;  %v445_v5 = vld [vmem:[#allocation16 + $0x110] sm:$0xff] }
 0x3cc   :  { %1165 = vrsqrt.f32 %v391_v6  ;;  %vm398_vm12 = vweird.f32 %v391_v6 }
 0x3d2   :  { %v1166_v7 = vpop.eup %1165 }
 0x3d3   :  { %v393_v8 = vmul.f32 %v1166_v7, %v391_v6  ;;  %vm399_vm11 = vweird.f32 %v1166_v7  ;;  %v474_v6 = vld [vmem:[#allocation16 + $0x1f8] sm:$0xff] }
 0x3d4   :  { %vm400_vm13 = vmor %vm398_vm12, %vm399_vm11 }
 0x3d5   :  { %v394_v9 = vmul.f32 %v1166_v7, %v393_v8  ;;  %v475_v8 = vld [vmem:[#allocation16 + $0x200] sm:$0xff] }
 0x3d6   :  { %661 = vmatpush.msrb.mxu3 %v475_v8  ;;  %v464_v8 = vld [vmem:[#allocation16 + $0x1a8] sm:$0xff] }
 0x3d7   :  { %v395_v10 = vmul.f32 0.5, %v394_v9  ;;  %v506_v9 = vld [vmem:[#allocation16 + $0x2f8] sm:$0xff] }
 0x3d9   :  { %v396_v11 = vsub.f32 1.5, %v395_v10 }
 0x3db   :  { %v397_v12 = vmul.f32 %v1166_v7, %v396_v11  ;;  %v471_v11 = vld [vmem:[#allocation16 + $0x1e0] sm:$0xff] }
 0x3dd   :  { %v401_v15 = vsel %vm400_vm13, %v1166_v7, %v397_v12  ;;  %v442_v12 = vld [vmem:[#allocation16 + $0xf8] sm:$0xff] }
 0x3de   :  { %v402_v16 = vmul.f32 %v401_v15, %v390_v13  ;;  %v472_v13 = vld [vmem:[#allocation16 + $0x1e8] sm:$0xff] }
 0x3df   :  { %v468_v15 = vld [vmem:[#allocation16 + $0x1c8] sm:$0xff]  ;;  %662 = vmatpush.msrb.mxu3 %v472_v13  ;;  %v413_v13 = vld [vmem:[#allocation16 + $0x10] sm:$0xff] }
 0x3e0   :  { %v406_v18 = vmul.f32 %v1157_v14, %v402_v16  ;;  %v503_v14 = vld [vmem:[#allocation16 + $0x2e0] sm:$0xff] }
 0x3e1   :  { %v439_v16 = vld [vmem:[#allocation16 + $0xe0] sm:$0xff] }
 0x3e2   :  { %v1625_v19 = vadd.f32 %v1158_v17, %v406_v18  ;;  %v469_v17 = vld [vmem:[#allocation16 + $0x1d0] sm:$0xff]  ;;  %v500_v18 = vld [vmem:[#allocation16 + $0x2c8] sm:$0xff] }
 0x3e3   :  { %663 = vmatpush.msrb.mxu3 %v469_v17 }
 0x3e4   :  { %534 = vmatpush.msrb.mxu0 %v1625_v19 }
 0x3e5   :  { %1122 = vmatmul.msk.f32.vlgmr.msrb.gmra.mxu0 %vm290_vm7, %v1613_v33  ;;  %664 = vmatpush.msrb.mxu3 %v466_v22  ;;  %v912_v22 = vld [vmem:[#allocation19 + $0xb8] sm:$0xff] }
 0x3e6   :  { %591 = vmatpush.msra.mxu0 %v504_v38  ;;  %v427_v38 = vld [vmem:[#allocation16 + $0x80] sm:$0xff] }
 0x3e7   :  { %665 = vmatpush.msrb.mxu3 %v463_v26  ;;  %v902_v26 = vld [vmem:[#allocation19 + $0x68] sm:$0xff] }
 0x3e8   :  { %592 = vmatpush.msra.mxu0 %v501_v39  ;;  %v452_v39 = vld [vmem:[#allocation16 + $0x148] sm:$0xff] }
 0x3e9   :  { %666 = vmatpush.msrb.mxu3 %v460_v31  ;;  %v890_v31 = vld [vmem:[#allocation19 + $0x8] sm:$0xff] }
 0x3ea   :  { %593 = vmatpush.msra.mxu0 %v498_v41  ;;  %v485_v41 = vld [vmem:[#allocation16 + $0x250] sm:$0xff] }
 0x3ec   :  { %594 = vmatpush.msra.mxu0 %v495_v44  ;;  %v907_v44 = vld [vmem:[#allocation19 + $0x90] sm:$0xff] }
 0x3ee   :  { %595 = vmatpush.msra.mxu0 %v492_v48  ;;  %v905_v48 = vld [vmem:[#allocation19 + $0x80] sm:$0xff] }
 0x3f0   :  { %596 = vmatpush.msra.mxu0 %v489_v50  ;;  %v443_v50 = vld [vmem:[#allocation16 + $0x100] sm:$0xff] }
 0x3f2   :  { %597 = vmatpush.msra.mxu0 %v486_v55  ;;  %v901_v55 = vld [vmem:[#allocation19 + $0x60] sm:$0xff] }
 0x3f4   :  { %598 = vmatpush.msra.mxu0 %v483_v59  ;;  %v434_v59 = vld [vmem:[#allocation16 + $0xb8] sm:$0xff] }
 0x3f6   :  { %599 = vmatpush.msra.mxu0 %v480_v63  ;;  %v425_v63 = vld [vmem:[#allocation16 + $0x70] sm:$0xff] }
 0x3f8   :  { %600 = vmatpush.msra.mxu0 %v477_v3  ;;  %v895_v3 = vld [vmem:[#allocation19 + $0x30] sm:$0xff] }
 0x3fa   :  { %601 = vmatpush.msra.mxu0 %v474_v6  ;;  %v893_v6 = vld [vmem:[#allocation19 + $0x20] sm:$0xff] }
 0x3fc   :  { %602 = vmatpush.msra.mxu0 %v471_v11  ;;  %v891_v11 = vld [vmem:[#allocation19 + $0x10] sm:$0xff] }
 0x3fe   :  { %603 = vmatpush.msra.mxu0 %v468_v15 }
 0x400   :  { %604 = vmatpush.msra.mxu0 %v465_v20  ;;  %v512_v20 = vld [vmem:[#allocation16 + $0x328] sm:$0xff] }
 0x402   :  { %605 = vmatpush.msra.mxu0 %v462_v24  ;;  %v906_v24 = vld [vmem:[#allocation19 + $0x88] sm:$0xff] }
 0x404   :  { %606 = vmatpush.msra.mxu0 %v459_v28  ;;  %v898_v28 = vld [vmem:[#allocation19 + $0x48] sm:$0xff] }
 0x406   :  { %691 = vmatpush.msrb.mxu0 %v458_v30  ;;  %v892_v30 = vld [vmem:[#allocation19 + $0x18] sm:$0xff] }
 0x408   :  { %692 = vmatpush.msrb.mxu0 %v455_v35 }
 0x40a   :  { %693 = vmatpush.msrb.mxu0 %v452_v39 }
 0x40c   :  { %694 = vmatpush.msrb.mxu0 %v449_v43 }
 0x462   :  { %v536_v36 = vpop.f32.mrf.mxu0 }
 0x463   :  { %560 = vrot.lane.b32.xlu0 %v536_v36, %s1494_s23  ;;  %554 = vmatpush.msrb.mxu1 %v536_v36  ;;  %v911_v36 = vld [vmem:[#allocation19 + $0xb0] sm:$0xff] }
 0x464   :  { %1123 = vmatmul.msk.f32.vlgmr.msrb.gmra.mxu1 %vm290_vm7, %v1613_v33  ;;  %v510_v33 = vld [vmem:[#allocation16 + $0x318] sm:$0xff]  ;;  %920 = vmatpush.msra.mxu3 %v911_v36 }
 0x465   :  { %623 = vmatpush.msra.mxu1 %v516_v45  ;;  %v482_v45 = vld [vmem:[#allocation16 + $0x238] sm:$0xff] }
 0x466   :  { %921 = vmatpush.msra.mxu3 %v909_v40 }
 0x467   :  { %624 = vmatpush.msra.mxu1 %v513_v47  ;;  %v446_v47 = vld [vmem:[#allocation16 + $0x118] sm:$0xff] }
 0x468   :  { %922 = vmatpush.msra.mxu3 %v907_v44  ;;  %695 = vmatpush.msrb.mxu0 %v446_v47 }
 0x469   :  { %625 = vmatpush.msra.mxu1 %v510_v33  ;;  %v479_v33 = vld [vmem:[#allocation16 + $0x220] sm:$0xff] }
 0x46a   :  { %923 = vmatpush.msra.mxu3 %v905_v48  ;;  %696 = vmatpush.msrb.mxu0 %v443_v50 }
 0x46b   :  { %626 = vmatpush.msra.mxu1 %v507_v51  ;;  %v903_v51 = vld [vmem:[#allocation19 + $0x70] sm:$0xff] }
 0x46c   :  { %924 = vmatpush.msra.mxu3 %v903_v51 }
 0x46d   :  { %631 = vmatpush.msrb.mxu1 %v457_v54  ;;  %v440_v54 = vld [vmem:[#allocation16 + $0xe8] sm:$0xff] }
 0x46e   :  { %697 = vmatpush.msrb.mxu0 %v440_v54  ;;  %925 = vmatpush.msra.mxu3 %v901_v55 }
 0x46f   :  { %632 = vmatpush.msrb.mxu1 %v454_v58  ;;  %v899_v58 = vld [vmem:[#allocation19 + $0x50] sm:$0xff] }
 0x470   :  { %698 = vmatpush.msrb.mxu0 %v437_v57  ;;  %926 = vmatpush.msra.mxu3 %v899_v58  ;;  %v847_v58 = vld [vmem:[#allocation17 + $0xf0] sm:$0xff] }
 0x471   :  { %633 = vmatpush.msrb.mxu1 %v451_v62  ;;  %v412_v62 = vld [vmem:[#allocation16 + $0x8] sm:$0xff] }
 0x472   :  { %699 = vmatpush.msrb.mxu0 %v434_v59  ;;  %927 = vmatpush.msra.mxu3 %v897_v0  ;;  %v879_v59 = vld [vmem:[#allocation17 + $0x1f0] sm:$0xff]  ;;  %v846_v0 = vld [vmem:[#allocation17 + $0xe8] sm:$0xff] }
 0x473   :  { %634 = vmatpush.msrb.mxu1 %v448_v2  ;;  %v422_v2 = vld [vmem:[#allocation16 + $0x58] sm:$0xff] }
 0x474   :  { %700 = vmatpush.msrb.mxu0 %v431_v60  ;;  %928 = vmatpush.msra.mxu3 %v895_v3  ;;  %v848_v60 = vld [vmem:[#allocation17 + $0xf8] sm:$0xff]  ;;  %v843_v3 = vld [vmem:[#allocation17 + $0xd0] sm:$0xff] }
 0x475   :  { %635 = vmatpush.msrb.mxu1 %v445_v5  ;;  %v419_v5 = vld [vmem:[#allocation16 + $0x40] sm:$0xff] }
 0x476   :  { %701 = vmatpush.msrb.mxu0 %v428_v61  ;;  %929 = vmatpush.msra.mxu3 %v893_v6  ;;  %v880_v61 = vld [vmem:[#allocation17 + $0x1f8] sm:$0xff] }
 0x477   :  { %636 = vmatpush.msrb.mxu1 %v442_v12  ;;  %v461_v12 = vld [vmem:[#allocation16 + $0x190] sm:$0xff]  ;;  %v876_v6 = vld [vmem:[#allocation17 + $0x1d8] sm:$0xff] }
 0x478   :  { %702 = vmatpush.msrb.mxu0 %v425_v63  ;;  %930 = vmatpush.msra.mxu3 %v891_v11  ;;  %v877_v63 = vld [vmem:[#allocation17 + $0x1e0] sm:$0xff]  ;;  %v842_v11 = vld [vmem:[#allocation17 + $0xc8] sm:$0xff] }
 0x479   :  { %637 = vmatpush.msrb.mxu1 %v439_v16  ;;  %v518_v16 = vld [vmem:[#allocation16 + $0x358] sm:$0xff] }
 0x47a   :  { %703 = vmatpush.msrb.mxu0 %v422_v2  ;;  %v878_v2 = vld [vmem:[#allocation17 + $0x1e8] sm:$0xff] }
 0x47b   :  { %638 = vmatpush.msrb.mxu1 %v436_v21  ;;  %v509_v21 = vld [vmem:[#allocation16 + $0x310] sm:$0xff] }
 0x47c   :  { %704 = vmatpush.msrb.mxu0 %v419_v5  ;;  %v844_v5 = vld [vmem:[#allocation17 + $0xd8] sm:$0xff] }
 0x47d   :  { %639 = vmatpush.msrb.mxu1 %v433_v25  ;;  %v904_v25 = vld [vmem:[#allocation19 + $0x78] sm:$0xff] }
 0x47f   :  { %640 = vmatpush.msrb.mxu1 %v430_v29  ;;  %v894_v29 = vld [vmem:[#allocation19 + $0x28] sm:$0xff] }
 0x481   :  { %641 = vmatpush.msrb.mxu1 %v427_v38 }
 0x483   :  { %642 = vmatpush.msrb.mxu1 %v424_v42 }
 0x485   :  { %643 = vmatpush.msrb.mxu1 %v421_v46 }
 0x487   :  { %644 = vmatpush.msrb.mxu1 %v418_v49 }
 0x489   :  { %645 = vmatpush.msrb.mxu1 %v415_v53 }
 0x48b   :  { %646 = vmatpush.msrb.mxu1 %v412_v62  ;;  %v845_v62 = vld [vmem:[#allocation17 + $0xe0] sm:$0xff] }
 0x4d5   :  { %v1632_v7 = vpop.permute.xlu0 %560 }
 0x4d6   :  { %v1637_v10 = vsel %vm345_vm9, %v1625_v19, %v1632_v7 }
 0x4d7   :  { %587 = vmatmul.f32.vlgmr.msrb.gmra.mxu2 %v1637_v10 }
 0x4d8   :  { %711 = vmatpush.msrb.mxu2 %v506_v9  ;;  %v416_v9 = vld [vmem:[#allocation16 + $0x28] sm:$0xff] }
 0x4d9   :  { %705 = vmatpush.msrb.mxu0 %v416_v9  ;;  %v873_v9 = vld [vmem:[#allocation17 + $0x1c0] sm:$0xff] }
 0x4da   :  { %712 = vmatpush.msrb.mxu2 %v503_v14  ;;  %v889_v14 = vld [vmem:[#allocation19] sm:$0xff] }
 0x4db   :  { %706 = vmatpush.msrb.mxu0 %v413_v13  ;;  %931 = vmatpush.msra.mxu3 %v889_v14  ;;  %v839_v13 = vld [vmem:[#allocation17 + $0xb0] sm:$0xff] }
 0x4dc   :  { %713 = vmatpush.msrb.mxu2 %v500_v18  ;;  %v515_v18 = vld [vmem:[#allocation16 + $0x340] sm:$0xff]  ;;  %v871_v14 = vld [vmem:[#allocation17 + $0x1b0] sm:$0xff] }
 0x4de   :  { %714 = vmatpush.msrb.mxu2 %v497_v23  ;;  %v910_v23 = vld [vmem:[#allocation19 + $0xa8] sm:$0xff] }
 0x4e0   :  { %715 = vmatpush.msrb.mxu2 %v494_v27  ;;  %v900_v27 = vld [vmem:[#allocation19 + $0x58] sm:$0xff] }
 0x4e1   :  { %v556_v34 = vpop.f32.mrf.mxu1 }
 0x4e2   :  { %564 = vrot.lane.b32.xlu1 %v556_v34, %s1492_s12  ;;  %716 = vmatpush.msrb.mxu2 %v491_v32 }
 0x4e4   :  { %717 = vmatpush.msrb.mxu2 %v488_v37 }
 0x4e6   :  { %718 = vmatpush.msrb.mxu2 %v485_v41 }
 0x4e8   :  { %719 = vmatpush.msrb.mxu2 %v482_v45 }
 0x4ea   :  { %720 = vmatpush.msrb.mxu2 %v479_v33 }
 0x4ec   :  { %721 = vmatpush.msrb.mxu2 %v476_v52 }
 0x4ee   :  { %722 = vmatpush.msrb.mxu2 %v473_v56 }
 0x4f0   :  { %723 = vmatpush.msrb.mxu2 %v470_v1  ;;  %v1495_v1 = vmov 288.0  }
 0x4f1   :  { %1167 = vrcp.f32 %v1495_v1  ;;  %v849_v1 = vld [vmem:[#allocation17 + $0x100] sm:$0xff] }
 0x4f2   :  { %724 = vmatpush.msrb.mxu2 %v467_v4  ;;  %v875_v4 = vld [vmem:[#allocation17 + $0x1d0] sm:$0xff] }
 0x4f4   :  { %725 = vmatpush.msrb.mxu2 %v464_v8  ;;  %v841_v8 = vld [vmem:[#allocation17 + $0xc0] sm:$0xff] }
 0x4f6   :  { %726 = vmatpush.msrb.mxu2 %v461_v12  ;;  %v874_v12 = vld [vmem:[#allocation17 + $0x1c8] sm:$0xff] }
 0x554   :  { %v565_v15 = vpop.permute.xlu1 %564 }
 0x555   :  { %1124 = vmatmul.msk.f32.vlgmr.msra.gmra.mxu1 %vm238_vm2, %v565_v15  ;;  %1125 = vmatmul.msk.f32.vlgmr.msra.gmra.mxu2 %vm238_vm2, %v565_v15  ;;  %v568_v17 = vsel %vm343_vm8, %v1632_v7, %v565_v15  ;;  %v908_v7 = vld [vmem:[#allocation19 + $0x98] sm:$0xff] }
 0x556   :  { %607 = vmatmul.f32.vlgmr.msra.gmra.mxu0 %v568_v17  ;;  %667 = vmatmul.f32.vlgmr.msrb.gmra.mxu3 %v568_v17 }
 0x557   :  { %743 = vmatpush.msra.mxu1 %v518_v16  ;;  %959 = vmatpush.msra.mxu0 %v847_v58  ;;  %v1669_v16 = vpop.eup %1167  ;;  %v854_v58 = vld [vmem:[#allocation17 + $0x128] sm:$0xff] }
 0x558   :  { %979 = vmatpush.msra.mxu2 %v879_v59  ;;  %1039 = vmatpush.msrb.mxu3 %v880_v61  ;;  %vm766_vm14 = vweird.f32 %v1669_v16  ;;  %v819_v59 = vld [vmem:[#allocation17 + $0x10] sm:$0xff] }
 0x559   :  { %744 = vmatpush.msra.mxu1 %v515_v18  ;;  %960 = vmatpush.msra.mxu0 %v845_v62  ;;  %v837_v18 = vld [vmem:[#allocation17 + $0xa0] sm:$0xff]  ;;  %v820_v62 = vld [vmem:[#allocation17 + $0x18] sm:$0xff] }
 0x55a   :  { %v588_v32 = vpop.f32.mrf.mxu2  ;;  %980 = vmatpush.msra.mxu2 %v877_v63  ;;  %1040 = vmatpush.msrb.mxu3 %v878_v2  ;;  %v852_v63 = vld [vmem:[#allocation17 + $0x118] sm:$0xff]  ;;  %v818_v2 = vld [vmem:[#allocation17 + $0x8] sm:$0xff] }
 0x55b   :  { %745 = vmatpush.msra.mxu1 %v512_v20  ;;  %961 = vmatpush.msra.mxu0 %v843_v3  ;;  %v869_v20 = vld [vmem:[#allocation17 + $0x1a0] sm:$0xff]  ;;  %v850_v3 = vld [vmem:[#allocation17 + $0x108] sm:$0xff] }
 0x55c   :  { %981 = vmatpush.msra.mxu2 %v875_v4  ;;  %1041 = vmatpush.msrb.mxu3 %v876_v6 }
 0x55d   :  { %746 = vmatpush.msra.mxu1 %v509_v21  ;;  %727 = vmatmul.f32.vlgmr.msrb.gmra.mxu2 %v568_v17  ;;  %v872_v17 = vld [vmem:[#allocation17 + $0x1b8] sm:$0xff]  ;;  %v838_v21 = vld [vmem:[#allocation17 + $0xa8] sm:$0xff] }
 0x55e   :  { %647 = vmatmul.f32.vlgmr.msrb.gmra.mxu1 %v1637_v10  ;;  %707 = vmatmul.f32.vlgmr.msrb.gmra.mxu0 %v1637_v10  ;;  %v896_v10 = vld [vmem:[#allocation19 + $0x38] sm:$0xff] }
 0x55f   :  { %940 = vmatpush.msrb.mxu1 %v912_v22  ;;  %1127 = vmatmul.msk.f32.vlgmr.msra.gmra.mxu3 %vm345_vm9, %v1625_v19  ;;  %v870_v22 = vld [vmem:[#allocation17 + $0x1a8] sm:$0xff] }
 0x560   :  { %962 = vmatpush.msra.mxu0 %v841_v8  ;;  %982 = vmatpush.msra.mxu2 %v873_v9  ;;  %v887_v9 = vld [vmem:[#allocation17 + $0x230] sm:$0xff] }
 0x561   :  { %941 = vmatpush.msrb.mxu1 %v910_v23  ;;  %1042 = vmatpush.msrb.mxu3 %v874_v12  ;;  %v762_v23 = vmul.f32 288.0, %v1669_v16  ;;  %v885_v12 = vld [vmem:[#allocation17 + $0x220] sm:$0xff] }
 0x562   :  { %963 = vmatpush.msra.mxu0 %v839_v13  ;;  %983 = vmatpush.msra.mxu2 %v871_v14  ;;  %v886_v14 = vld [vmem:[#allocation17 + $0x228] sm:$0xff] }
 0x563   :  { %942 = vmatpush.msrb.mxu1 %v908_v7  ;;  %1043 = vmatpush.msrb.mxu3 %v872_v17  ;;  %v835_v7 = vld [vmem:[#allocation17 + $0x90] sm:$0xff] }
 0x564   :  { %964 = vmatpush.msra.mxu0 %v837_v18  ;;  %984 = vmatpush.msra.mxu2 %v869_v20  ;;  %v881_v18 = vld [vmem:[#allocation17 + $0x200] sm:$0xff]  ;;  %v882_v20 = vld [vmem:[#allocation17 + $0x208] sm:$0xff] }
 0x565   :  { %943 = vmatpush.msrb.mxu1 %v906_v24  ;;  %1044 = vmatpush.msrb.mxu3 %v870_v22  ;;  %v867_v24 = vld [vmem:[#allocation17 + $0x190] sm:$0xff] }
 0x566   :  { %1126 = vmatmul.msk.f32.vlgmr.msra.gmra.mxu1 %vm238_vm2, %v565_v15  ;;  %v840_v15 = vld [vmem:[#allocation17 + $0xb8] sm:$0xff]  ;;  %965 = vmatpush.msra.mxu0 %v835_v7 }
 0x567   :  { %944 = vmatpush.msrb.mxu1 %v904_v25  ;;  %v836_v25 = vld [vmem:[#allocation17 + $0x98] sm:$0xff]  ;;  %985 = vmatpush.msra.mxu2 %v867_v24 }
 0x569   :  { %945 = vmatpush.msrb.mxu1 %v902_v26  ;;  %v868_v26 = vld [vmem:[#allocation17 + $0x198] sm:$0xff] }
 0x56a   :  { %1045 = vmatpush.msrb.mxu3 %v868_v26  ;;  %v754_v26 = vld [vmem:[%s1702_s9] sm:$0x7] }
 0x56b   :  { %946 = vmatpush.msrb.mxu1 %v900_v27  ;;  %v833_v27 = vld [vmem:[#allocation17 + $0x80] sm:$0xff] }
 0x56c   :  { %966 = vmatpush.msra.mxu0 %v833_v27 }
 0x56d   :  { %947 = vmatpush.msrb.mxu1 %v898_v28  ;;  %v865_v28 = vld [vmem:[#allocation17 + $0x180] sm:$0xff] }
 0x56e   :  { %986 = vmatpush.msra.mxu2 %v865_v28  ;;  %v755_v28 = vld [vmem:[%s1703_s10] sm:$0x7] }
 0x56f   :  { %948 = vmatpush.msrb.mxu1 %v896_v10  ;;  %v834_v10 = vld [vmem:[#allocation17 + $0x88] sm:$0xff] }
 0x571   :  { %949 = vmatpush.msrb.mxu1 %v894_v29  ;;  %v866_v29 = vld [vmem:[#allocation17 + $0x188] sm:$0xff] }
 0x572   :  { %1046 = vmatpush.msrb.mxu3 %v866_v29 }
 0x573   :  { %950 = vmatpush.msrb.mxu1 %v892_v30  ;;  %v763_v30 = vsub.f32 1.0, %v762_v23 }
 0x575   :  { %951 = vmatpush.msrb.mxu1 %v890_v31  ;;  %v831_v31 = vld [vmem:[#allocation17 + $0x70] sm:$0xff] }
 0x576   :  { %1128 = vmatmul.msk.f32.vlgmr.msrb.gmra.mxu1 %vm345_vm9, %v1625_v19  ;;  %967 = vmatpush.msra.mxu0 %v831_v31  ;;  %v799_v31 = vperm.slane %v754_v26, 1 }
 0x577   :  { %1019 = vmatpush.msra.mxu1 %v848_v60  ;;  %v851_v60 = vld [vmem:[#allocation17 + $0x110] sm:$0xff] }
 0x579   :  { %1020 = vmatpush.msra.mxu1 %v846_v0  ;;  %v817_v0 = vld [vmem:[#allocation17] sm:$0xff] }
 0x57b   :  { %1021 = vmatpush.msra.mxu1 %v844_v5 }
 0x57d   :  { %1022 = vmatpush.msra.mxu1 %v842_v11  ;;  %v888_v11 = vld [vmem:[#allocation17 + $0x238] sm:$0xff] }
 0x57f   :  { %1023 = vmatpush.msra.mxu1 %v840_v15  ;;  %v883_v15 = vld [vmem:[#allocation17 + $0x210] sm:$0xff] }
 0x581   :  { %1024 = vmatpush.msra.mxu1 %v838_v21 }
 0x583   :  { %1025 = vmatpush.msra.mxu1 %v836_v25 }
 0x585   :  { %1026 = vmatpush.msra.mxu1 %v834_v10 }
 0x5d2   :  { %v628_v34 = vpop.f32.mrf.mxu1 }
 0x5d3   :  { %v608_v35 = vpop.f32.mrf.mxu0 }
 0x5d4   :  { %v609_v38 = vadd.f32 %v608_v35, %v588_v32  ;;  %v863_v32 = vld [vmem:[#allocation17 + $0x170] sm:$0xff]  ;;  %v864_v35 = vld [vmem:[#allocation17 + $0x178] sm:$0xff] }
 0x5d5   :  { %987 = vmatpush.msra.mxu2 %v863_v32  ;;  %1047 = vmatpush.msrb.mxu3 %v864_v35  ;;  %v808_v35 = vperm.slane %v755_v28, 0 }
 0x5d6   :  { %v629_v42 = vadd.f32 %v628_v34, %v609_v38  ;;  %v832_v34 = vld [vmem:[#allocation17 + $0x78] sm:$0xff]  ;;  %v830_v38 = vld [vmem:[#allocation17 + $0x68] sm:$0xff] }
 0x5d7   :  { %1027 = vmatpush.msra.mxu1 %v832_v34 }
 0x5d8   :  { %v688_v36 = vpop.f32.mrf.mxu2  ;;  %v1654_v47 = vmax.f32 %v629_v42, 0.0  ;;  %v859_v42 = vld [vmem:[#allocation17 + $0x150] sm:$0xff] }
 0x5d9   :  { %v668_v37 = vpop.f32.mrf.mxu3  ;;  %1028 = vmatpush.msra.mxu1 %v830_v38 }
 0x5da   :  { %v769_v51 = vmul.f32 %v1654_v47, %v1654_v47 }
 0x5db   :  { %v648_v39 = vpop.f32.mrf.mxu1  ;;  %v708_v43 = vpop.f32.mrf.mxu0 }
 0x5dc   :  { %v669_v40 = vadd.f32 %v668_v37, %v648_v39  ;;  %v861_v37 = vld [vmem:[#allocation17 + $0x160] sm:$0xff]  ;;  %v862_v39 = vld [vmem:[#allocation17 + $0x168] sm:$0xff] }
 0x5dd   :  { %988 = vmatpush.msra.mxu2 %v861_v37  ;;  %1048 = vmatpush.msrb.mxu3 %v862_v39  ;;  %v809_v37 = vperm.slane %v755_v28, 1 }
 0x5de   :  { %v689_v41 = vadd.f32 %v688_v36, %v669_v40  ;;  %v829_v36 = vld [vmem:[#allocation17 + $0x60] sm:$0xff]  ;;  %v764_v40 = vmul.f32 %v1669_v16, %v763_v30  ;;  %v798_v30 = vperm.slane %v754_v26, 0 }
 0x5df   :  { %968 = vmatpush.msra.mxu0 %v829_v36  ;;  %989 = vmatpush.msra.mxu2 %v859_v42 }
 0x5e0   :  { %v728_v44 = vpop.f32.mrf.mxu2  ;;  %v1652_v45 = vmax.f32 %v689_v41, 0.0  ;;  %v827_v41 = vld [vmem:[#allocation17 + $0x50] sm:$0xff] }
 0x5e1   :  { %v729_v46 = vadd.f32 %v728_v44, %v708_v43  ;;  %v828_v43 = vld [vmem:[#allocation17 + $0x58] sm:$0xff]  ;;  %969 = vmatpush.msra.mxu0 %v827_v41 }
 0x5e2   :  { %v770_v19 = vmul.f32 %v1652_v45, %v1652_v45  ;;  %v756_v50 = vadd.f32 %v1652_v45, %v1654_v47  ;;  %v860_v44 = vld [vmem:[#allocation17 + $0x158] sm:$0xff]  ;;  %1029 = vmatpush.msra.mxu1 %v828_v43 }
 0x5e3   :  { %v748_v48 = vpop.f32.mrf.mxu1  ;;  %1049 = vmatpush.msrb.mxu3 %v860_v44  ;;  %v800_v44 = vperm.slane %v754_v26, 2 }
 0x5e4   :  { %v749_v33 = vadd.f32 %v748_v48, %v729_v46  ;;  %v772_v55 = vadd.f32 %v770_v19, %v769_v51  ;;  %v825_v46 = vld [vmem:[#allocation17 + $0x40] sm:$0xff]  ;;  %v858_v19 = vld [vmem:[#allocation17 + $0x148] sm:$0xff]  ;;  %v823_v51 = vld [vmem:[#allocation17 + $0x30] sm:$0xff] }
 0x5e5   :  { %v857_v48 = vld [vmem:[#allocation17 + $0x140] sm:$0xff]  ;;  %970 = vmatpush.msra.mxu0 %v825_v46  ;;  %1050 = vmatpush.msrb.mxu3 %v858_v19 }
 0x5e6   :  { %v1658_v49 = vmax.f32 %v749_v33, 0.0  ;;  %v826_v33 = vld [vmem:[#allocation17 + $0x48] sm:$0xff]  ;;  %990 = vmatpush.msra.mxu2 %v857_v48 }
 0x5e7   :  { %1030 = vmatpush.msra.mxu1 %v826_v33  ;;  %971 = vmatpush.msra.mxu0 %v823_v51  ;;  %v933_v33 = vpop.f32.mrf.mxu3 }
 0x5e8   :  { %v757_v52 = vsel %vm238_vm2, %v1658_v49, 0.0  ;;  %v771_v53 = vmul.f32 %v1658_v49, %v1658_v49 }
 0x5e9   :  { %v758_v54 = vadd.f32 %v757_v52, %v756_v50  ;;  %v765_v50 = vadd.f32 %v1669_v16, %v764_v40  ;;  %v855_v52 = vld [vmem:[#allocation17 + $0x130] sm:$0xff] }
 0x5ea   :  { %v773_v56 = vsel %vm238_vm2, %v771_v53, 0.0  ;;  %v824_v53 = vld [vmem:[#allocation17 + $0x38] sm:$0xff]  ;;  %991 = vmatpush.msra.mxu2 %v855_v52 }
 0x5eb   :  { %759 = vadd.xlane.f32.xlu2 %v758_v54  ;;  %v774_v57 = vadd.f32 %v773_v56, %v772_v55  ;;  %v856_v54 = vld [vmem:[#allocation17 + $0x138] sm:$0xff]  ;;  %1031 = vmatpush.msra.mxu1 %v824_v53  ;;  %v821_v55 = vld [vmem:[#allocation17 + $0x20] sm:$0xff]  ;;  %v767_v61 = vsel %vm766_vm14, %v1669_v16, %v765_v50 }
 0x5ec   :  { %1051 = vmatpush.msrb.mxu3 %v856_v54  ;;  %v853_v56 = vld [vmem:[#allocation17 + $0x120] sm:$0xff]  ;;  %972 = vmatpush.msra.mxu0 %v821_v55  ;;  %v884_v16 = vld [vmem:[#allocation17 + $0x218] sm:$0xff] }
 0x5ed   :  { %775 = vadd.xlane.f32.xlu1 %v774_v57  ;;  %v822_v57 = vld [vmem:[#allocation17 + $0x28] sm:$0xff]  ;;  %992 = vmatpush.msra.mxu2 %v853_v56  ;;  %v1079_v50 = vld [vmem:[%s1706_s13] sm:$0x3]  ;;  %s1100_s13 = sshll.u32 %s1496_s3, 4  ;;  %s1101_s13 = int_to_ptr.vmem [resolvable:$true] %s1100_s13 }
 0x5ee   :  { %1032 = vmatpush.msra.mxu1 %v822_v57  ;;  %1052 = vmatpush.msrb.mxu3 %v854_v58  ;;  %v1082_v56 = vperm.slane %v1079_v50, 1 }
 0x5ef   :  { %973 = vmatpush.msra.mxu0 %v819_v59  ;;  %993 = vmatpush.msra.mxu2 %v851_v60 }
 0x5f0   :  { %1033 = vmatpush.msra.mxu1 %v820_v62  ;;  %1053 = vmatpush.msrb.mxu3 %v852_v63 }
 0x5f1   :  { %974 = vmatpush.msra.mxu0 %v817_v0  ;;  %994 = vmatpush.msra.mxu2 %v849_v1 }
 0x5f2   :  { %1034 = vmatpush.msra.mxu1 %v818_v2  ;;  %1054 = vmatpush.msrb.mxu3 %v850_v3 }
 0x5f3   :  { %1011 = vmatpush.msrb.mxu2 %v887_v9  ;;  %1071 = vmatpush.msrb.mxu0 %v888_v11  ;;  %v953_v48 = vpop.f32.mrf.mxu1 }
 0x5f5   :  { %1012 = vmatpush.msrb.mxu2 %v885_v12  ;;  %1072 = vmatpush.msrb.mxu0 %v886_v14 }
 0x5f7   :  { %1013 = vmatpush.msrb.mxu2 %v883_v15  ;;  %1073 = vmatpush.msrb.mxu0 %v884_v16 }
 0x5f9   :  { %1014 = vmatpush.msrb.mxu2 %v881_v18  ;;  %1074 = vmatpush.msrb.mxu0 %v882_v20 }
 0x65e   :  { %v760_v4 = vpop.xlane.xlu2 %759 }
 0x65f   :  { %v768_v5 = vmul.f32 %v767_v61, %v760_v4 }
 0x660   :  { %v776_v6 = vpop.xlane.xlu1 %775 }
 0x661   :  { %v777_v8 = vmul.f32 %v776_v6, %v767_v61  ;;  %v778_v13 = vmul.f32 %v768_v5, %v768_v5  ;;  %v780_v10 = vsub.f32 %v1654_v47, %v768_v5  ;;  %v781_v29 = vsub.f32 %v1652_v45, %v768_v5 }
 0x662   :  { %v782_v38 = vsub.f32 %v1658_v49, %v768_v5  ;;  %v810_v47 = vperm.slane %v755_v28, 2  ;;  %v1081_v61 = vperm.slane %v1079_v50, 0 }
 0x663   :  { %v779_v17 = vsub.f32 %v777_v8, %v778_v13 }
 0x665   :  { %v783_v21 = vadd.f32 1e-05, %v779_v17 }
 0x667   :  { %1169 = vrsqrt.f32 %v783_v21  ;;  %vm790_vm0 = vweird.f32 %v783_v21 }
 0x66d   :  { %v1170_v22 = vpop.eup %1169 }
 0x66e   :  { %v785_v23 = vmul.f32 %v1170_v22, %v783_v21  ;;  %vm791_vm15 = vweird.f32 %v1170_v22 }
 0x66f   :  { %vm792_vm1 = vmor %vm790_vm0, %vm791_vm15 }
 0x670   :  { %v786_v7 = vmul.f32 %v1170_v22, %v785_v23 }
 0x672   :  { %v787_v24 = vmul.f32 0.5, %v786_v7 }
 0x674   :  { %v788_v25 = vsub.f32 1.5, %v787_v24 }
 0x676   :  { %v789_v27 = vmul.f32 %v1170_v22, %v788_v25 }
 0x678   :  { %v793_v32 = vsel %vm792_vm1, %v1170_v22, %v789_v27 }
 0x679   :  { %v794_v34 = vmul.f32 %v793_v32, %v780_v10  ;;  %v795_v36 = vmul.f32 %v793_v32, %v781_v29  ;;  %v796_v41 = vmul.f32 %v793_v32, %v782_v38 }
 0x67b   :  { %v804_v39 = vmul.f32 %v798_v30, %v794_v34  ;;  %v805_v40 = vmul.f32 %v799_v31, %v795_v36  ;;  %v806_v45 = vmul.f32 %v800_v44, %v796_v41 }
 0x67d   :  { %v814_v42 = vadd.f32 %v808_v35, %v804_v39  ;;  %v815_v43 = vadd.f32 %v809_v37, %v805_v40  ;;  %v816_v46 = vadd.f32 %v810_v47, %v806_v45 }
 0x67f   :  { %975 = vmatmul.f32.vlgmr.msra.gmra.mxu0 %v814_v42  ;;  %995 = vmatmul.f32.vlgmr.msra.gmra.mxu2 %v815_v43 }
 0x680   :  { %1035 = vmatmul.f32.vlgmr.msra.gmra.mxu1 %v814_v42  ;;  %1055 = vmatmul.f32.vlgmr.msrb.gmra.mxu3 %v815_v43 }
 0x687   :  { %1129 = vmatmul.msk.f32.vlgmr.msrb.gmra.mxu2 %vm238_vm2, %v816_v46  ;;  %1130 = vmatmul.msk.f32.vlgmr.msrb.gmra.mxu0 %vm238_vm2, %v816_v46 }
 0x6fc   :  { %v976_v49 = vpop.f32.mrf.mxu0 }
 0x6fd   :  { %v1036_v19 = vpop.f32.mrf.mxu1  ;;  %v977_v58 = vadd.f32 %v976_v49, %v933_v33 }
 0x6fe   :  { %v1037_v51 = vadd.f32 %v1036_v19, %v953_v48 }
 0x702   :  { %v996_v52 = vpop.f32.mrf.mxu2 }
 0x703   :  { %v1056_v53 = vpop.f32.mrf.mxu3  ;;  %v997_v60 = vadd.f32 %v996_v52, %v977_v58 }
 0x704   :  { %v1057_v54 = vadd.f32 %v1056_v53, %v1037_v51  ;;  %v1076_v55 = vpop.f32.mrf.mxu0 }
 0x706   :  { %v1077_v57 = vadd.f32 %v1076_v55, %v1057_v54 }
 0x708   :  { %v1086_v59 = vadd.f32 %v1082_v56, %v1077_v57 }
 0x70a   :  { %vm1088_vm2 = vcmp.ge.f32.partialorder %v1086_v59, 0.0  ;;  %v1090_v62 = vmul.f32 0.01, %v1086_v59  ;;  %v1016_v63 = vpop.f32.mrf.mxu2 }
 0x70b   :  { %v1017_v0 = vadd.f32 %v1016_v63, %v997_v60 }
 0x70c   :  { %v1092_v1 = vsel %vm1088_vm2, %v1086_v59, %v1090_v62 }
 0x70d   :  { %v1085_v2 = vadd.f32 %v1081_v61, %v1017_v0  ;;  %1094 = vst [vmem:[#allocation20 + $0x8] sm:$0xff] %v1092_v1 }
 0x70f   :  { %vm1087_vm3 = vcmp.ge.f32.partialorder %v1085_v2, 0.0  ;;  %v1089_v3 = vmul.f32 0.01, %v1085_v2 }
 0x711   :  { %v1091_v4 = vsel %vm1087_vm3, %v1085_v2, %v1089_v3 }
 0x712   :  { %1093 = vst [vmem:[#allocation20] sm:$0xff] %v1091_v4 }
 0x713   :  { %1105 = dma.vmem_to_hbm [thread:$0]  %s1101_s13, 256, %s1103_s17, [#allocation4]  }
 0x714   :  { %1471 = dma.done.wait [#allocation4], 256  }
 0x715   :  { %1472 = vsyncadd [#allocation4], 4294967040 }
 0x716   :  { %1110 = vsyncpa [#allocation3], 1 }
 0x717   :  { %1111 = vsyncpa [#allocation6], 1 }
 0x718   :  { %1112 = vsyncpa [#allocation9], 1 }
 0x719   :  { %1113 = vsyncpa [#allocation12], 1 }
 0x71a   :  { %1114 = vsyncpa [#allocation15], 1 }
 0x71b   :  { %1115 = vsyncpa [#allocation18], 1 }
 0x71c   :  { %1116 = vsyncpa [#allocation4], 1 }

</bundles_post_ra>
